<compile_context>
chip_gen: v5e
topology: v5e:2x2
jax: 0.10.0
libtpu: 0.0.40
codegen_flags: <defaults>
</compile_context>

<pallas_src>
import functools

import jax
import jax.numpy as jnp
from jax.experimental import pallas as pl
from jax.experimental.pallas import tpu as pltpu


def _vflip_tile_kernel(th, img_ref, out_ref):
    """Reverses the `th` rows inside one (TB, th, W) sublane tile.

    Block-level reversal along H is done for free in the DMA layer via the
    output BlockSpec index_map; only the intra-tile reversal remains here.
    `th` is a small trace-time constant (8 for f32-tiled H), so the loop
    unrolls into a handful of guaranteed-to-lower row stores.
    """
    block = img_ref[...]            # single full-tile load
    if th == 1:
        out_ref[...] = block
    else:
        # TODO(synk): if/when Mosaic lowers lax.rev on the sublane axis, this
        # becomes `out_ref[...] = jnp.flip(block, axis=1)` (one XLU permute).
        for h in range(th):
            out_ref[:, h, :] = block[:, th - 1 - h, :]


def _pick_channel_block(nc, th, w, itemsize, target_bytes=2 << 20):
    """Channels per block.

    Big enough to amortize the ~0.35us/step pipeline overhead, small enough
    that 2 buffers x (in + out) x slab stays well under every generation's
    scoped-VMEM default, and capped so the channel grid keeps >= 4 steps
    (v7x dual-core sharding + >=2 steps for double-buffering).
    """
    cap = max(1, target_bytes // max(1, th * w * itemsize))
    tb = min(nc, cap)
    if nc >= 8:
        tb = min(tb, pl.cdiv(nc, 4))
    return max(1, tb)


def _vflip_image(image):
    """Vertical flip (along H) of an (N, C, H, W) image, always-flipping."""
    N, C, H, W = image.shape
    NC = N * C
    img3 = image.reshape(NC, H, W)

    # 8-row sublane tiles along H when possible; otherwise one full-H tile.
    TH = 8 if H % 8 == 0 else H
    nH = H // TH
    TB = _pick_channel_block(NC, TH, W, image.dtype.itemsize)

    flipped = pl.pallas_call(
        functools.partial(_vflip_tile_kernel, TH),
        out_shape=jax.ShapeDtypeStruct((NC, H, W), image.dtype),
        grid=(pl.cdiv(NC, TB), nH),
        in_specs=[pl.BlockSpec((TB, TH, W), lambda c, h: (c, h, 0))],
        # Coarse flip in the DMA layer: tile h lands at tile nH-1-h.
        out_specs=pl.BlockSpec((TB, TH, W), lambda c, h: (c, nH - 1 - h, 0)),
        compiler_params=pltpu.CompilerParams(
            dimension_semantics=("parallel", "arbitrary")),
    )(img3)
    return flipped.reshape(N, C, H, W)


@jax.jit
def random_vertical_flip(image, label, flip_flag):
    """image: (N, C, H, W); label: (M, K); flip_flag: int32 array of shape (1,)."""
    W = image.shape[-1]
    flip = flip_flag[0] != 0

    # Image: full HBM read+write only when the flip actually fires.
    img_out = jax.lax.cond(flip, _vflip_image, lambda x: x, image)

    # Label: tiny (M, K) fixup done in plain jnp (XLA fuses it; no launch).
    # NOTE: uses image.shape[-1] (W), not H, to match the PyTorch module.
    col = jax.lax.broadcasted_iota(jnp.int32, label.shape, 1)
    adjusted = jnp.asarray(W, label.dtype) - label
    lbl_out = jnp.where(jnp.logical_and(flip, col == 2), adjusted, label)

    return img_out, lbl_out


if __name__ == "__main__":
    key = jax.random.PRNGKey(0)
    k_img, k_lbl, k_rand = jax.random.split(key, 3)

    N, C, H, W = 2, 4, 16, 16
    M, K = 8, 5
    p = 0.5

    image = jax.random.normal(k_img, (N, C, H, W), dtype=jnp.float32)
    label = jax.random.uniform(k_lbl, (M, K), dtype=jnp.float32) * float(W)

    # torch.rand(1) < p  -->  deterministic JAX equivalent.  Kept as a device
    # array so the lax.cond branch selection stays on-device.
    u = jax.random.uniform(k_rand, (1,))
    flip_flag = (u < p).astype(jnp.int32)

    img_out, lbl_out = random_vertical_flip(image, label, flip_flag)
    jax.block_until_ready((img_out, lbl_out))

    # Plain-JAX reference check.
    flip = bool(flip_flag[0])
    if flip:
        ref_img = jnp.flip(image, axis=-2)
        ref_lbl = label.at[:, 2].set(float(W) - label[:, 2])
    else:
        ref_img, ref_lbl = image, label
    assert jnp.allclose(img_out, ref_img), "image mismatch"
    assert jnp.allclose(lbl_out, ref_lbl), "label mismatch"

    print("KERNEL_OK")
</pallas_src>

<mosaic_0001>
module attributes {stable_mosaic.version = 11 : i64} {
  func.func @_vflip_tile_kernel(%arg0: i32, %arg1: i32, %arg2: memref<2x8x16xf32, #tpu.memory_space<vmem>>, %arg3: memref<2x8x16xf32, #tpu.memory_space<vmem>>) attributes {dimension_semantics = [#tpu.dimension_semantics<parallel>, #tpu.dimension_semantics<arbitrary>], iteration_bounds = array<i64: 4, 2>, scalar_prefetch = 0 : i64, scratch_operands = 0 : i64, tpu.core_type = #tpu.core_type<tc>, window_params = [{transform_indices = @transform_0, window_bounds = array<i64: 2, 8, 16>}, {transform_indices = @transform_1, window_bounds = array<i64: 2, 8, 16>}]} {
    %c0 = arith.constant 0 : index
    %c0_0 = arith.constant 0 : index
    %c0_1 = arith.constant 0 : index
    %0 = vector.load %arg2[%c0, %c0_0, %c0_1] : memref<2x8x16xf32, #tpu.memory_space<vmem>>, vector<2x8x16xf32>
    %1 = vector.extract_strided_slice %0 {offsets = [0, 7, 0], sizes = [2, 1, 16], strides = [1, 1, 1]} : vector<2x8x16xf32> to vector<2x1x16xf32>
    %2 = vector.shape_cast %1 : vector<2x1x16xf32> to vector<2x16xf32>
    %c0_2 = arith.constant 0 : index
    %c0_3 = arith.constant 0 : index
    %c0_4 = arith.constant 0 : index
    %3 = vector.load %arg3[%c0_2, %c0_3, %c0_4] : memref<2x8x16xf32, #tpu.memory_space<vmem>>, vector<2x1x16xf32>
    %4 = vector.shape_cast %3 : vector<2x1x16xf32> to vector<2x16xf32>
    %5 = vector.shape_cast %2 : vector<2x16xf32> to vector<2x1x16xf32>
    tpu.vector_store %arg3[%c0_2, %c0_3, %c0_4], %5 {strides = array<i32>} : memref<2x8x16xf32, #tpu.memory_space<vmem>>, vector<2x1x16xf32>,
    %6 = vector.extract_strided_slice %0 {offsets = [0, 6, 0], sizes = [2, 1, 16], strides = [1, 1, 1]} : vector<2x8x16xf32> to vector<2x1x16xf32>
    %7 = vector.shape_cast %6 : vector<2x1x16xf32> to vector<2x16xf32>
    %c0_5 = arith.constant 0 : index
    %c1 = arith.constant 1 : index
    %c0_6 = arith.constant 0 : index
    %8 = vector.load %arg3[%c0_5, %c1, %c0_6] : memref<2x8x16xf32, #tpu.memory_space<vmem>>, vector<2x1x16xf32>
    %9 = vector.shape_cast %8 : vector<2x1x16xf32> to vector<2x16xf32>
    %10 = vector.shape_cast %7 : vector<2x16xf32> to vector<2x1x16xf32>
    tpu.vector_store %arg3[%c0_5, %c1, %c0_6], %10 {strides = array<i32>} : memref<2x8x16xf32, #tpu.memory_space<vmem>>, vector<2x1x16xf32>,
    %11 = vector.extract_strided_slice %0 {offsets = [0, 5, 0], sizes = [2, 1, 16], strides = [1, 1, 1]} : vector<2x8x16xf32> to vector<2x1x16xf32>
    %12 = vector.shape_cast %11 : vector<2x1x16xf32> to vector<2x16xf32>
    %c0_7 = arith.constant 0 : index
    %c2 = arith.constant 2 : index
    %c0_8 = arith.constant 0 : index
    %13 = vector.load %arg3[%c0_7, %c2, %c0_8] : memref<2x8x16xf32, #tpu.memory_space<vmem>>, vector<2x1x16xf32>
    %14 = vector.shape_cast %13 : vector<2x1x16xf32> to vector<2x16xf32>
    %15 = vector.shape_cast %12 : vector<2x16xf32> to vector<2x1x16xf32>
    tpu.vector_store %arg3[%c0_7, %c2, %c0_8], %15 {strides = array<i32>} : memref<2x8x16xf32, #tpu.memory_space<vmem>>, vector<2x1x16xf32>,
    %16 = vector.extract_strided_slice %0 {offsets = [0, 4, 0], sizes = [2, 1, 16], strides = [1, 1, 1]} : vector<2x8x16xf32> to vector<2x1x16xf32>
    %17 = vector.shape_cast %16 : vector<2x1x16xf32> to vector<2x16xf32>
    %c0_9 = arith.constant 0 : index
    %c3 = arith.constant 3 : index
    %c0_10 = arith.constant 0 : index
    %18 = vector.load %arg3[%c0_9, %c3, %c0_10] : memref<2x8x16xf32, #tpu.memory_space<vmem>>, vector<2x1x16xf32>
    %19 = vector.shape_cast %18 : vector<2x1x16xf32> to vector<2x16xf32>
    %20 = vector.shape_cast %17 : vector<2x16xf32> to vector<2x1x16xf32>
    tpu.vector_store %arg3[%c0_9, %c3, %c0_10], %20 {strides = array<i32>} : memref<2x8x16xf32, #tpu.memory_space<vmem>>, vector<2x1x16xf32>,
    %21 = vector.extract_strided_slice %0 {offsets = [0, 3, 0], sizes = [2, 1, 16], strides = [1, 1, 1]} : vector<2x8x16xf32> to vector<2x1x16xf32>
    %22 = vector.shape_cast %21 : vector<2x1x16xf32> to vector<2x16xf32>
    %c0_11 = arith.constant 0 : index
    %c4 = arith.constant 4 : index
    %c0_12 = arith.constant 0 : index
    %23 = vector.load %arg3[%c0_11, %c4, %c0_12] : memref<2x8x16xf32, #tpu.memory_space<vmem>>, vector<2x1x16xf32>
    %24 = vector.shape_cast %23 : vector<2x1x16xf32> to vector<2x16xf32>
    %25 = vector.shape_cast %22 : vector<2x16xf32> to vector<2x1x16xf32>
    tpu.vector_store %arg3[%c0_11, %c4, %c0_12], %25 {strides = array<i32>} : memref<2x8x16xf32, #tpu.memory_space<vmem>>, vector<2x1x16xf32>,
    %26 = vector.extract_strided_slice %0 {offsets = [0, 2, 0], sizes = [2, 1, 16], strides = [1, 1, 1]} : vector<2x8x16xf32> to vector<2x1x16xf32>
    %27 = vector.shape_cast %26 : vector<2x1x16xf32> to vector<2x16xf32>
    %c0_13 = arith.constant 0 : index
    %c5 = arith.constant 5 : index
    %c0_14 = arith.constant 0 : index
    %28 = vector.load %arg3[%c0_13, %c5, %c0_14] : memref<2x8x16xf32, #tpu.memory_space<vmem>>, vector<2x1x16xf32>
    %29 = vector.shape_cast %28 : vector<2x1x16xf32> to vector<2x16xf32>
    %30 = vector.shape_cast %27 : vector<2x16xf32> to vector<2x1x16xf32>
    tpu.vector_store %arg3[%c0_13, %c5, %c0_14], %30 {strides = array<i32>} : memref<2x8x16xf32, #tpu.memory_space<vmem>>, vector<2x1x16xf32>,
    %31 = vector.extract_strided_slice %0 {offsets = [0, 1, 0], sizes = [2, 1, 16], strides = [1, 1, 1]} : vector<2x8x16xf32> to vector<2x1x16xf32>
    %32 = vector.shape_cast %31 : vector<2x1x16xf32> to vector<2x16xf32>
    %c0_15 = arith.constant 0 : index
    %c6 = arith.constant 6 : index
    %c0_16 = arith.constant 0 : index
    %33 = vector.load %arg3[%c0_15, %c6, %c0_16] : memref<2x8x16xf32, #tpu.memory_space<vmem>>, vector<2x1x16xf32>
    %34 = vector.shape_cast %33 : vector<2x1x16xf32> to vector<2x16xf32>
    %35 = vector.shape_cast %32 : vector<2x16xf32> to vector<2x1x16xf32>
    tpu.vector_store %arg3[%c0_15, %c6, %c0_16], %35 {strides = array<i32>} : memref<2x8x16xf32, #tpu.memory_space<vmem>>, vector<2x1x16xf32>,
    %36 = vector.extract_strided_slice %0 {offsets = [0, 0, 0], sizes = [2, 1, 16], strides = [1, 1, 1]} : vector<2x8x16xf32> to vector<2x1x16xf32>
    %37 = vector.shape_cast %36 : vector<2x1x16xf32> to vector<2x16xf32>
    %c0_17 = arith.constant 0 : index
    %c7 = arith.constant 7 : index
    %c0_18 = arith.constant 0 : index
    %38 = vector.load %arg3[%c0_17, %c7, %c0_18] : memref<2x8x16xf32, #tpu.memory_space<vmem>>, vector<2x1x16xf32>
    %39 = vector.shape_cast %38 : vector<2x1x16xf32> to vector<2x16xf32>
    %40 = vector.shape_cast %37 : vector<2x16xf32> to vector<2x1x16xf32>
    tpu.vector_store %arg3[%c0_17, %c7, %c0_18], %40 {strides = array<i32>} : memref<2x8x16xf32, #tpu.memory_space<vmem>>, vector<2x1x16xf32>,
    return
  }
  func.func @transform_0(%arg0: i32, %arg1: i32) -> (i32, i32, i32) {
    %c0_i32 = arith.constant 0 : i32
    %c0_i32_0 = arith.constant 0 : i32
    return %arg0, %arg1, %c0_i32 : i32, i32, i32
  }
  func.func @transform_1(%arg0: i32, %arg1: i32) -> (i32, i32, i32) {
    %c1_i32 = arith.constant 1 : i32
    %0 = arith.subi %c1_i32, %arg1 : i32
    %c0_i32 = arith.constant 0 : i32
    %c0_i32_0 = arith.constant 0 : i32
    return %arg0, %0, %c0_i32 : i32, i32, i32
  }
}

</mosaic_0001>

<bundles_post_ra>
// kernel: branch_1_fun.1
= control target key start
LH: loop header
LB: loop body
LE: loop exit
PB: predicated region body
PF: predicated region fallthrough
CT: control target
= control target key end

     0   :  { %6 = vsyncpa [#allocation3], 0  ;;  %s687_s0 = inlined_call_operand.hbm [shape: f32[8,16,16], index: 0, kind: input, shape index: {}]   ;;  %s688_s1 = inlined_call_operand.vmem [shape: f32[8,16,16], index: 1, kind: output, shape index: {}]  }
   0x1   :  { %8 = vsyncpa [#allocation3 + $0x1], 0  ;;  %s545_s6 = smov 0   ;;  %s547_s7 = smov 0  }
   0x2   :  { %s549_s8 = smov 0   ;;  %s551_s9 = smov 0  }
   0x3   :  { %s553_s10 = smov 0   ;;  %s555_s11 = smov 0  }
   0x4   :  { %s557_s12 = smov 0   ;;  %s559_s13 = smov 0  }
   0x5   :  { %s561_s14 = smov 0   ;;  %s563_s15 = smov 0  }
   0x6 LB: > { %s309_s16 = sadd.s32 4294967295, %s530_s15   ;;  %s23_s17 = sadd.s32 1, %s522_s13  ;;  %s530_s15 = sphi %s563_s15, %s14_s15   ;;  %s526_s14 = sphi %s561_s14, %s706_s14   ;;  %s522_s13 = sphi %s559_s13, %s705_s13   ;;  %s518_s12 = sphi %s557_s12, %s704_s12   ;;  %s514_s11 = sphi %s555_s11, %s703_s11   ;;  %s510_s10 = sphi %s553_s10, %s702_s10   ;;  %s506_s9 = sphi %s551_s9, %s701_s9   ;;  %s502_s8 = sphi %s549_s8, %s700_s8   ;;  %s498_s7 = sphi %s547_s7, %s699_s7   ;;  %s494_s6 = sphi %s545_s6, %s698_s6  }
   0x7   : > { %p24_p0 = scmp.ge.s32.totalorder %s23_s17, 2  ;;  %s26_s18 = sadd.s32 1, %s526_s14 }
   0x8   : > { %s35_s19 = sadd.s32 1, %s510_s10  ;;  %p42_p1 = scmp.ne.s32.totalorder %s510_s10, %s506_s9 }
   0x9   : > { %s708_s17 = smov (%p24_p0, %s23_s17), 0  ;;  %s710_s18 = smov (!%p24_p0, %s26_s18), %s526_s14 }
   0xa   : > { %691 = sst [smem:[#allocation6_spill]] %s708_s17  ;;  %s31_s20 = ssub.s32 %s522_s13, %s708_s17 }
   0xb   : > { %p43_p2 = scmp.eq.s32.totalorder %s530_s15, 0  ;;  %p28_p3 = scmp.ge.s32.totalorder %s710_s18, 4 }
   0xc   : > { %p48_p4 = scmp.ne.s32.totalorder %s506_s9, %s502_s8  ;;  %p49_p6 = scmp.eq.s32.totalorder %s309_s16, 0 }
   0xd   : > { %p606_p5 = por %p43_p2, %p42_p1  ;;  %s712_s18 = smov (%p28_p3, %s710_s18), 0 }
   0xe   : > { %693 = sst [smem:[#allocation7_spill]] %s712_s18  ;;  %p612_p7 = por %p49_p6, %p48_p4 }
   0xf   : > { %s58_s23 = ssub.s32 1, %s522_s13  ;;  %s30_s24 = ssub.s32 %s526_s14, %s712_s18 }
  0x10   : > { %s59_s25 = ssub.s32 1, %s708_s17  ;;  %s32_s26 = sor.u32 %s31_s20, %s30_s24 }
  0x11   : > { %s61_s27 = ssub.s32 %s58_s23, %s59_s25  ;;  %p33_p8 = scmp.eq.s32.totalorder %s32_s26, 0 }
  0x12   : > { %s62_s28 = sor.u32 %s61_s27, %s30_s24  ;;  %s65_s29 = sadd.s32 1, %s498_s7 }
  0x13   : > { %p63_p9 = scmp.eq.s32.totalorder %s62_s28, 0  ;;  %p75_p10 = scmp.ne.s32.totalorder %s498_s7, %s494_s6 }
  0x14   : > { %s622_s30 = scalar_select %p33_p8, %s510_s10, %s35_s19  }
  0x15   : > { %s625_s2 = scalar_select %p63_p9, %s498_s7, %s65_s29  }
  0x16   : > { %p76_p11 = scmp.eq.s32.totalorder %s309_s16, 7  ;;  %p334_p12 = scmp.lt.s32.totalorder %s530_s15, 8 }
  0x17   : > { %s102_s4 = sand.u32 1, %s510_s10   ;;  %s326_s8 = sshll.u32 %s526_s14, 2 }
  0x18   : > { %p630_p13 = por %p76_p11, %p75_p10  ;;  %s313_s5 = sshll.u32 %s102_s4, 4 }
  0x19   : > { %s111_s20 = sadd.s32 %s522_s13, %s326_s8  ;;  %s106_s23 = scalar_lea.vmem [#allocation2], %s313_s5 }
  0x1a   : > { %s116_s24 = sshll.u32 %s106_s23, 4  ;;  %s316_s25 = sshll.u32 %s111_s20, 3  ;;  %s117_s24 = int_to_ptr.vmem [resolvable:$true] %s116_s24 }
  0x1b   : > { %s113_s27 = scalar_lea.hbm %s687_s0, %s316_s25  ;;  %p331_p0 = pnand %p334_p12, %p606_p5 }
  0x1c   : > { %s114_s16 = sshll.u32 %s113_s27, 4  ;;  %s103_s28 = scalar_lea.sflag [#allocation3], %s102_s4  ;;  %s115_s16 = int_to_ptr.hbm [resolvable:$true] %s114_s16 }
  0x1d   : > { %s532_s29 = smov 256   ;;  %s533_s18 = smov 128  }
  0x1e   : > { %s534_s17 = smov 8   ;;  %p317_p1 = scmp.ge.s32.totalorder %s530_s15, 1 }
  0x1f   : > { %333 = dma.hbm_to_vmem [thread:$0]  (!%p331_p0), %s115_s16, 256, %s117_s24, %s103_s28, %s532_s29, %s533_s18, %s534_s17  }
  0x20   : > { %p124_p2 = scmp.lt.s32.totalorder %s530_s15, 9 }
  0x22   : > { %p125_p3 = pnand %p317_p1, %p124_p2 }
  0x23   : > { %s130_s5 = sand.u32 (!%p125_p3), 1, %s506_s9  }
  0x24   : > { %128 = sbr.rel (%p125_p3) target bundleno = 69 (0x45), region = 24  ;;  %s318_s8 = sshll.u32 (!%p125_p3), %s130_s5, 4 }
  0x25   : > { %s131_s20 = scalar_lea.sflag (!%p125_p3), [#allocation3], %s130_s5  ;;  %s134_s23 = scalar_lea.vmem (!%p125_p3), [#allocation2], %s318_s8 }
  0x29   : > { %489 = dma.done.wait (%p612_p7), %s131_s20, 256  }
  0x2a   : > { %491 = vsyncadd (%p612_p7), %s131_s20, 4294967040  ;;  %s150_s21 = sand.u32 1, %s494_s6   ;;  %vm158_vm0 = vcmask 130055   ;;  %v156_v0 = vld [vmem:[%s134_s23] sm:$0xff]  ;;  %v157_v1 = vld [vmem:[%s134_s23 + $0x8] sm:$0xff]  ;;  %vm161_vm1 = vcmask 129030  }
  0x2b   : > { %s319_s4 = sshll.u32 %s150_s21, 4  ;;  %vm164_vm2 = vcmask 128005   ;;  %vm167_vm3 = vcmask 126980   ;;  %vm170_vm4 = vcmask 125955   ;;  %vm173_vm5 = vcmask 124930   ;;  %s189_s6 = ssub.s32 (%p630_p13), 1, %s514_s11 }
  0x2c   : > { %s152_s17 = scalar_lea.vmem [#allocation4], %s319_s4  ;;  %vm176_vm6 = vcmask 123905   ;;  %vm179_vm7 = vcmask 122880   ;;  %s327_s18 = sshll.u32 (%p630_p13), %s518_s12, 2 }
  0x2d   : > { %159 = vst.msk [vmem:[%s152_s17 - $0x7] sm:$0x80] %vm158_vm0, %v156_v0  ;;  %s192_s22 = sadd.s32 (%p630_p13), %s327_s18, %s189_s6 }
  0x2e   : > { %160 = vst.msk [vmem:[%s152_s17 + $0x1] sm:$0x80] %vm158_vm0, %v157_v1  ;;  %s323_s24 = sshll.u32 (%p630_p13), %s192_s22, 3 }
  0x2f   : > { %162 = vst.msk [vmem:[%s152_s17 - $0x5] sm:$0x40] %vm161_vm1, %v156_v0  ;;  %s194_s26 = scalar_lea.vmem (%p630_p13), %s688_s1, %s323_s24 }
  0x30   : > { %163 = vst.msk [vmem:[%s152_s17 + $0x3] sm:$0x40] %vm161_vm1, %v157_v1 }
  0x31   : > { %165 = vst.msk [vmem:[%s152_s17 - $0x3] sm:$0x20] %vm164_vm2, %v156_v0 }
  0x32   : > { %166 = vst.msk [vmem:[%s152_s17 + $0x5] sm:$0x20] %vm164_vm2, %v157_v1 }
  0x33   : > { %168 = vst.msk [vmem:[%s152_s17 - $0x1] sm:$0x10] %vm167_vm3, %v156_v0 }
  0x34   : > { %169 = vst.msk [vmem:[%s152_s17 + $0x7] sm:$0x10] %vm167_vm3, %v157_v1 }
  0x35   : > { %171 = vst.msk [vmem:[%s152_s17 + $0x1] sm:$0x8] %vm170_vm4, %v156_v0 }
  0x36   : > { %172 = vst.msk [vmem:[%s152_s17 + $0x9] sm:$0x8] %vm170_vm4, %v157_v1 }
  0x37   : > { %174 = vst.msk [vmem:[%s152_s17 + $0x3] sm:$0x4] %vm173_vm5, %v156_v0 }
  0x38   : > { %175 = vst.msk [vmem:[%s152_s17 + $0xb] sm:$0x4] %vm173_vm5, %v157_v1  ;;  %188 = sbr.rel (!%p630_p13) target bundleno = 69 (0x45), region = 32 }
  0x39   : > { %177 = vst.msk [vmem:[%s152_s17 + $0x5] sm:$0x2] %vm176_vm6, %v156_v0 }
  0x3a   : > { %178 = vst.msk [vmem:[%s152_s17 + $0xd] sm:$0x2] %vm176_vm6, %v157_v1 }
  0x3b   : > { %180 = vst.msk [vmem:[%s152_s17 + $0x7] sm:$0x1] %vm179_vm7, %v156_v0 }
  0x3c   : > { %181 = vst.msk [vmem:[%s152_s17 + $0xf] sm:$0x1] %vm179_vm7, %v157_v1 }
  0x42   : > { %v225_v2 = vld [vmem:[%s152_s17] sm:$0xff] }
  0x43   : > { %v227_v3 = vld [vmem:[%s152_s17 + $0x8] sm:$0xff]  ;;  %226 = vst [vmem:[%s194_s26] sm:$0xff] %v225_v2 }
  0x44   : > { %228 = vst [vmem:[%s194_s26 + $0x10] sm:$0xff] %v227_v3 }
  0x45 PF: > { %s14_s15 = sadd.s32 1, %s530_s15   ;;  %s696_s3 = sld [smem:[#allocation6_spill]] }
  0x46   : > { %p11_p4 = scmp.ge.s32.totalorder %s14_s15, 10   ;;  %s697_s27 = sld [smem:[#allocation7_spill]] }
  0x47   : > { %s698_s6 = smov %s498_s7  ;;  %s699_s7 = smov %s625_s2 }
  0x48   : > { %s700_s8 = smov %s506_s9  ;;  %s701_s9 = smov %s510_s10 }
  0x49   : > { %s702_s10 = smov %s622_s30  ;;  %s703_s11 = smov %s522_s13 }
  0x4a   : > { %s704_s12 = smov %s526_s14  ;;  %13 = sbr.rel (!%p11_p4) target bundleno = 6 (0x6), region = 102 }
  0x4b   : > { %s705_s13 = smov %s696_s3 }
  0x4c   : > { %s706_s14 = smov %s697_s27 }
  0x4f   :  { %244 = vsyncpa [#allocation3], 1 }
  0x50   :  { %246 = vsyncpa [#allocation3 + $0x1], 1 }

</bundles_post_ra>
